<compile_context>
chip_gen: v5e
topology: v5e:2x2
jax: 0.10.0
libtpu: 0.0.40
codegen_flags: <defaults>
</compile_context>

<pallas_src>
import functools
import math

import jax
import jax.numpy as jnp
from jax import lax
from jax.experimental import pallas as pl
from jax.experimental.pallas import tpu as pltpu


def _layernorm_kernel(x_ref, w_ref, b_ref, o_ref, *, eps, d_model, d_pad,
                      use_mxu_reduce):
    # x_ref: (tile_rows, d_pad); w_ref/b_ref: (1, d_pad) float32.
    x = x_ref[...].astype(jnp.float32)
    inv_n = jnp.float32(1.0 / d_model)
    padded = d_pad != d_model

    if use_mxu_reduce:
        # v6e/v7x: 2 XLU units would saturate before HBM; do the row sums on
        # the otherwise-idle MXU instead.  The ones column also acts as the
        # lane mask when d_model was padded to a multiple of 128.
        if padded:
            ones_col = (lax.broadcasted_iota(jnp.int32, (d_pad, 1), 0)
                        < d_model).astype(jnp.float32)
        else:
            ones_col = jnp.ones((d_pad, 1), dtype=jnp.float32)
        mean = jnp.dot(x, ones_col, preferred_element_type=jnp.float32) * inv_n
        diff = x - mean
        var = jnp.dot(diff * diff, ones_col,
                      preferred_element_type=jnp.float32) * inv_n
    else:
        # v5e / unknown: XLU reductions (3 hetero XLUs on v5e, HBM-bound).
        if padded:
            lane_mask = lax.broadcasted_iota(jnp.int32, (1, d_pad), 1) < d_model
            xm = jnp.where(lane_mask, x, 0.0)
            mean = jnp.sum(xm, axis=-1, keepdims=True) * inv_n
            diff = x - mean
            dm = jnp.where(lane_mask, diff, 0.0)
            var = jnp.sum(dm * dm, axis=-1, keepdims=True) * inv_n
        else:
            mean = jnp.sum(x, axis=-1, keepdims=True) * inv_n
            diff = x - mean
            var = jnp.sum(diff * diff, axis=-1, keepdims=True) * inv_n

    denom = jnp.sqrt(var) + eps                    # eps on std (module semantics)

    # EUP reciprocal on the tiny (tile_rows, 1) column, refined with two
    # Newton-Raphson steps -> full f32 precision, then broadcast-multiply.
    inv = pl.reciprocal(denom, approx=True)
    inv = inv * (2.0 - denom * inv)
    inv = inv * (2.0 - denom * inv)

    out = (diff * inv) * w_ref[...] + b_ref[...]
    o_ref[...] = out.astype(o_ref.dtype)


def _device_kind():
    try:
        return jax.devices()[0].device_kind.lower()
    except Exception:
        return ""


def layer_norm(x, weight, bias, eps=1e-5, tile_rows=None):
    """x: (..., d_model); weight/bias: (d_model,).  Output matches x.dtype."""
    orig_shape = x.shape
    d_model = orig_shape[-1]
    rows = int(math.prod(orig_shape[:-1])) if len(orig_shape) > 1 else 1

    # Pad the normalization axis to a lane-dense multiple of 128 if needed.
    d_pad = ((d_model + 127) // 128) * 128
    x2d = x.reshape(rows, d_model)
    pad = d_pad - d_model
    if pad:
        x2d = jnp.pad(x2d, ((0, 0), (0, pad)))
        w1 = jnp.pad(weight.astype(jnp.float32), (0, pad))
        b1 = jnp.pad(bias.astype(jnp.float32), (0, pad))
    else:
        w1 = weight.astype(jnp.float32)
        b1 = bias.astype(jnp.float32)
    w2d = w1.reshape(1, d_pad)
    b2d = b1.reshape(1, d_pad)

    itemsize = jnp.dtype(x.dtype).itemsize
    sub = {4: 8, 2: 16, 1: 32}.get(itemsize, 8)   # sublane packing per dtype width

    kind = _device_kind()
    is_v7 = ("v7" in kind) or ("tpu7" in kind)
    is_v6 = "v6" in kind
    use_mxu_reduce = is_v7 or is_v6

    # Per-buffer tile byte budget: 4 MiB on v7x (64 MiB VMEM), 8 MiB on
    # 128-MiB-VMEM parts (v5e/v6e).  Default tile = the computed maximum.
    per_buf_cap = (4 << 20) if is_v7 else (8 << 20)
    vmem_ceiling = (48 << 20) if is_v7 else (96 << 20)

    max_tile_rows = max(sub, (per_buf_cap // max(1, d_pad * itemsize)) // sub * sub)
    if tile_rows is None:
        tile_rows = max_tile_rows
    tile_rows = max(sub, min(int(tile_rows), max_tile_rows))
    tile_rows = ((tile_rows + sub - 1) // sub) * sub

    # v7x has 2 TensorCores: keep at least 2 grid steps whenever splittable so
    # the "parallel" axis shards across both cores.
    if is_v7 and rows > sub:
        half = max(sub, (((rows + 1) // 2) // sub) * sub)
        tile_rows = min(tile_rows, half)

    if rows <= tile_rows:
        # Single block: a row dim equal to the full array extent is always legal.
        tile_rows = rows

    grid = (pl.cdiv(rows, tile_rows),)

    # VMEM budget: double-buffered in+out tiles, ~3 f32 intermediate tiles,
    # resident params, + 2 MiB slack; generation-aware ceiling, no floor.
    tile_io_bytes = tile_rows * d_pad * itemsize
    f32_tile_bytes = tile_rows * d_pad * 4
    vmem_limit = (2 * 2 * tile_io_bytes
                  + 3 * f32_tile_bytes
                  + 4 * d_pad * 4
                  + (2 << 20))
    vmem_limit = int(min(vmem_ceiling, vmem_limit))

    kernel = functools.partial(_layernorm_kernel, eps=eps, d_model=d_model,
                               d_pad=d_pad, use_mxu_reduce=use_mxu_reduce)

    out2d = pl.pallas_call(
        kernel,
        out_shape=jax.ShapeDtypeStruct((rows, d_pad), x.dtype),
        grid_spec=pltpu.PrefetchScalarGridSpec(
            num_scalar_prefetch=0,
            grid=grid,
            in_specs=[
                pl.BlockSpec((tile_rows, d_pad), lambda i: (i, 0)),
                pl.BlockSpec((1, d_pad), lambda i: (0, 0)),
                pl.BlockSpec((1, d_pad), lambda i: (0, 0)),
            ],
            out_specs=pl.BlockSpec((tile_rows, d_pad), lambda i: (i, 0)),
        ),
        compiler_params=pltpu.CompilerParams(
            dimension_semantics=("parallel",),
            vmem_limit_bytes=vmem_limit,
        ),
    )(x2d, w2d, b2d)

    if pad:
        out2d = out2d[:, :d_model]
    return out2d.reshape(orig_shape)


def _reference(x, w, b, eps):
    xf = x.astype(jnp.float32)
    mean = jnp.mean(xf, axis=-1, keepdims=True)
    std = jnp.sqrt(jnp.mean((xf - mean) ** 2, axis=-1, keepdims=True))
    return w.astype(jnp.float32) * ((xf - mean) / (std + eps)) + b.astype(jnp.float32)


if __name__ == "__main__":
    key = jax.random.PRNGKey(0)
    k1, k2, k3, k4 = jax.random.split(key, 4)
    eps = 1e-5

    # 1) Lane-dense last axis (d_model multiple of 128), f32, module-init params.
    batch, seq, d_model = 2, 8, 128
    x = jax.random.normal(k1, (batch, seq, d_model), dtype=jnp.float32)
    weight = jnp.ones((d_model,), dtype=jnp.float32)   # module __init__: ones
    bias = jnp.zeros((d_model,), dtype=jnp.float32)    # module __init__: zeros
    out = jax.block_until_ready(layer_norm(x, weight, bias, eps=eps))
    ref = _reference(x, weight, bias, eps)
    assert out.shape == x.shape
    assert jnp.allclose(out, ref, atol=1e-5, rtol=1e-5), "mismatch (f32, d=128)"

    # 2) d_model NOT a multiple of 128 (exercises the padded/masked path),
    #    non-trivial weight/bias.
    d2 = 96
    x2 = jax.random.normal(k2, (batch, seq, d2), dtype=jnp.float32)
    w2 = 1.0 + 0.1 * jax.random.normal(k3, (d2,), dtype=jnp.float32)
    b2 = 0.1 * jax.random.normal(k4, (d2,), dtype=jnp.float32)
    out2 = jax.block_until_ready(layer_norm(x2, w2, b2, eps=eps))
    ref2 = _reference(x2, w2, b2, eps)
    assert out2.shape == x2.shape
    assert jnp.allclose(out2, ref2, atol=1e-5, rtol=1e-5), "mismatch (f32, d=96)"

    # 3) bf16 activations stay bf16 end-to-end (halves HBM traffic); f32 math
    #    inside the kernel, bf16 writeback -> looser tolerance.
    x3 = x.astype(jnp.bfloat16)
    out3 = jax.block_until_ready(layer_norm(x3, weight, bias, eps=eps))
    ref3 = _reference(x3, weight, bias, eps)
    assert out3.dtype == jnp.bfloat16
    assert jnp.allclose(out3.astype(jnp.float32), ref3, atol=3e-2, rtol=3e-2), \
        "mismatch (bf16)"

    print("KERNEL_OK")
</pallas_src>

<mosaic_0001>
module attributes {stable_mosaic.version = 11 : i64} {
  func.func @_layernorm_kernel(%arg0: i32, %arg1: memref<16x128xf32, #tpu.memory_space<vmem>>, %arg2: memref<1x128xf32, #tpu.memory_space<vmem>>, %arg3: memref<1x128xf32, #tpu.memory_space<vmem>>, %arg4: memref<16x128xf32, #tpu.memory_space<vmem>>) attributes {dimension_semantics = [#tpu.dimension_semantics<parallel>], iteration_bounds = array<i64: 1>, scalar_prefetch = 0 : i64, scratch_operands = 0 : i64, tpu.core_type = #tpu.core_type<tc>, window_params = [{transform_indices = @transform_0, window_bounds = array<i64: 16, 128>}, {pipeline_mode = #tpu.pipeline_mode<synchronous>, transform_indices = @transform_1, window_bounds = array<i64: 1, 128>}, {pipeline_mode = #tpu.pipeline_mode<synchronous>, transform_indices = @transform_2, window_bounds = array<i64: 1, 128>}, {transform_indices = @transform_3, window_bounds = array<i64: 16, 128>}]} {
    %c0 = arith.constant 0 : index
    %c0_0 = arith.constant 0 : index
    %0 = vector.load %arg1[%c0, %c0_0] : memref<16x128xf32, #tpu.memory_space<vmem>>, vector<16x128xf32>
    %cst = arith.constant dense<0.000000e+00> : vector<16xf32>
    %1 = vector.multi_reduction <add>, %0, %cst [1] : vector<16x128xf32> to vector<16xf32>
    %2 = vector.shape_cast %1 : vector<16xf32> to vector<16x1xf32>
    %cst_1 = arith.constant 7.812500e-03 : f32
    %3 = vector.broadcast %cst_1 : f32 to vector<16x1xf32>
    %4 = arith.mulf %2, %3 : vector<16x1xf32>
    %5 = vector.broadcast %4 : vector<16x1xf32> to vector<16x128xf32>
    %6 = arith.subf %0, %5 : vector<16x128xf32>
    %7 = arith.mulf %6, %6 : vector<16x128xf32>
    %cst_2 = arith.constant dense<0.000000e+00> : vector<16xf32>
    %8 = vector.multi_reduction <add>, %7, %cst_2 [1] : vector<16x128xf32> to vector<16xf32>
    %9 = vector.shape_cast %8 : vector<16xf32> to vector<16x1xf32>
    %cst_3 = arith.constant 7.812500e-03 : f32
    %10 = vector.broadcast %cst_3 : f32 to vector<16x1xf32>
    %11 = arith.mulf %9, %10 : vector<16x1xf32>
    %12 = math.sqrt %11 : vector<16x1xf32>
    %cst_4 = arith.constant 9.99999974E-6 : f32
    %13 = vector.broadcast %cst_4 : f32 to vector<16x1xf32>
    %14 = arith.addf %12, %13 : vector<16x1xf32>
    %15 = tpu.reciprocal %14 {approx = true} : vector<16x1xf32> -> vector<16x1xf32>
    %16 = arith.mulf %14, %15 : vector<16x1xf32>
    %cst_5 = arith.constant 2.000000e+00 : f32
    %17 = vector.broadcast %cst_5 : f32 to vector<16x1xf32>
    %18 = arith.subf %17, %16 : vector<16x1xf32>
    %19 = arith.mulf %15, %18 : vector<16x1xf32>
    %20 = arith.mulf %14, %19 : vector<16x1xf32>
    %cst_6 = arith.constant 2.000000e+00 : f32
    %21 = vector.broadcast %cst_6 : f32 to vector<16x1xf32>
    %22 = arith.subf %21, %20 : vector<16x1xf32>
    %23 = arith.mulf %19, %22 : vector<16x1xf32>
    %24 = vector.broadcast %23 : vector<16x1xf32> to vector<16x128xf32>
    %25 = arith.mulf %6, %24 : vector<16x128xf32>
    %c0_7 = arith.constant 0 : index
    %c0_8 = arith.constant 0 : index
    %26 = vector.load %arg2[%c0_7, %c0_8] : memref<1x128xf32, #tpu.memory_space<vmem>>, vector<1x128xf32>
    %27 = vector.broadcast %26 : vector<1x128xf32> to vector<16x128xf32>
    %28 = arith.mulf %25, %27 : vector<16x128xf32>
    %c0_9 = arith.constant 0 : index
    %c0_10 = arith.constant 0 : index
    %29 = vector.load %arg3[%c0_9, %c0_10] : memref<1x128xf32, #tpu.memory_space<vmem>>, vector<1x128xf32>
    %30 = vector.broadcast %29 : vector<1x128xf32> to vector<16x128xf32>
    %31 = arith.addf %28, %30 : vector<16x128xf32>
    %c0_11 = arith.constant 0 : index
    %c0_12 = arith.constant 0 : index
    %32 = vector.load %arg4[%c0_11, %c0_12] : memref<16x128xf32, #tpu.memory_space<vmem>>, vector<16x128xf32>
    tpu.vector_store %arg4[%c0_11, %c0_12], %31 {strides = array<i32>} : memref<16x128xf32, #tpu.memory_space<vmem>>, vector<16x128xf32>,
    return
  }
  func.func @transform_0(%arg0: i32) -> (i32, i32) {
    %c0_i32 = arith.constant 0 : i32
    %c0_i32_0 = arith.constant 0 : i32
    return %arg0, %c0_i32 : i32, i32
  }
  func.func @transform_1(%arg0: i32) -> (i32, i32) {
    %c0_i32 = arith.constant 0 : i32
    %c0_i32_0 = arith.constant 0 : i32
    %c0_i32_1 = arith.constant 0 : i32
    return %c0_i32, %c0_i32_0 : i32, i32
  }
  func.func @transform_2(%arg0: i32) -> (i32, i32) {
    %c0_i32 = arith.constant 0 : i32
    %c0_i32_0 = arith.constant 0 : i32
    %c0_i32_1 = arith.constant 0 : i32
    return %c0_i32, %c0_i32_0 : i32, i32
  }
  func.func @transform_3(%arg0: i32) -> (i32, i32) {
    %c0_i32 = arith.constant 0 : i32
    %c0_i32_0 = arith.constant 0 : i32
    return %arg0, %c0_i32 : i32, i32
  }
}

</mosaic_0001>

<bundles_post_ra>
// kernel: tpu_custom_call.1
= control target key start
LH: loop header
LB: loop body
LE: loop exit
PB: predicated region body
PF: predicated region fallthrough
CT: control target
= control target key end

     0   :  { %8 = vsyncpa [#allocation3], 0  ;;  %s275_s0 = inlined_call_operand.hbm [shape: f32[16,128], index: 0, kind: input, shape index: {}]   ;;  %s276_s1 = inlined_call_operand.hbm [shape: f32[1,128], index: 1, kind: input, shape index: {}]   ;;  %s277_s2 = inlined_call_operand.vmem [shape: f32[1,128], index: 2, kind: input, shape index: {}]   ;;  %s278_s3 = inlined_call_operand.hbm [shape: f32[16,128], index: 3, kind: output, shape index: {}]  }
   0x1   :  { %9 = vsyncpa [#allocation6], 0 }
   0x2   :  { %10 = vsyncpa [#allocation4], 0  ;;  %s15_s14 = sshll.u32 %s275_s0, 4  ;;  %s232_s15 = smov [#allocation2]   ;;  %s16_s14 = int_to_ptr.hbm [resolvable:$true] %s15_s14 }
   0x3   :  { %s17_s16 = sshll.u32 %s232_s15, 4  ;;  %s29_s19 = sshll.u32 %s276_s1, 4  ;;  %s18_s16 = int_to_ptr.vmem [resolvable:$true] %s17_s16  ;;  %s30_s19 = int_to_ptr.hbm [resolvable:$true] %s29_s19 }
   0x4   :  { %s233_s20 = smov 128   ;;  %s234_s21 = smov 8  }
   0x5   :  { %23 = dma.hbm_to_vmem [thread:$0]  %s16_s14, 256, %s18_s16, [#allocation3], %s233_s20, %s233_s20, %s234_s21  }
   0x6   :  { %s235_s22 = smov [#allocation5]  }
   0x7   :  { %s31_s23 = sshll.u32 %s235_s22, 4  ;;  %s32_s23 = int_to_ptr.vmem [resolvable:$true] %s31_s23 }
   0x8   :  { %34 = dma.hbm_to_vmem [thread:$0]  %s30_s19, 16, %s32_s23, [#allocation6]  }
   0x9   :  { %226 = dma.done.wait [#allocation3], 256  }
   0xa   :  { %227 = vsyncadd [#allocation3], 4294967040 }
   0xb   :  { %228 = dma.done.wait [#allocation6], 16  }
   0xc   :  { %229 = vsyncadd [#allocation6], 4294967280  ;;  %v45_v0 = vld [vmem:[#allocation2] sm:$0xff]  ;;  %v46_v1 = vld [vmem:[#allocation2 + $0x8] sm:$0xff]  ;;  %s236_s24 = smov [#allocation7]   ;;  %s125_s28 = sshll.u32 %s278_s3, 4  ;;  %s126_s28 = int_to_ptr.hbm [resolvable:$true] %s125_s28 }
   0xd   :  { %47 = vadd.xlane.f32.xlu0 %v45_v0  ;;  %v144_v46 = vld [vmem:[#allocation5] ss:$0 sm:$0xff]  ;;  %v145_v49 = vld [vmem:[%s277_s2] ss:$0 sm:$0xff]  ;;  %s123_s25 = sshll.u32 %s236_s24, 4  ;;  %s124_s25 = int_to_ptr.vmem [resolvable:$true] %s123_s25 }
  0x15   :  { %49 = vadd.xlane.f32.xlu0 %v46_v1 }
  0x80   :  { %v48_v2 = vpop.xlane.xlu0 %47 }
  0x81   :  { %v51_v3 = vmul.f32 0.0078125, %v48_v2 }
  0x83   :  { %v53_v4 = vsub.f32 %v45_v0, %v51_v3 }
  0x85   :  { %v55_v5 = vmul.f32 %v53_v4, %v53_v4 }
  0x87   :  { %57 = vadd.xlane.f32.xlu1 %v55_v5 }
  0x88   :  { %v50_v6 = vpop.xlane.xlu0 %49 }
  0x89   :  { %v52_v7 = vmul.f32 0.0078125, %v50_v6 }
  0x8b   :  { %v54_v8 = vsub.f32 %v46_v1, %v52_v7 }
  0x8d   :  { %v56_v9 = vmul.f32 %v54_v8, %v54_v8 }
  0x8f   :  { %59 = vadd.xlane.f32.xlu1 %v56_v9 }
  0xfa   :  { %v58_v10 = vpop.xlane.xlu1 %57 }
  0xfb   :  { %v61_v11 = vmul.f32 0.0078125, %v58_v10 }
  0xfd   :  { %146 = vrsqrt.f32 %v61_v11  ;;  %vm70_vm0 = vcmp.eq.f32.partialorder %v61_v11, inf  ;;  %v73_v24 = vand.u32 2147483648, %v61_v11  ;;  %vm72_vm1 = vcmp.eq.f32.partialorder %v61_v11, 0.0 }
 0x102   :  { %v60_v12 = vpop.xlane.xlu1 %59 }
 0x103   :  { %v147_v13 = vpop.eup %146  ;;  %v62_v14 = vmul.f32 0.0078125, %v60_v12 }
 0x104   :  { %v64_v15 = vmul.f32 %v147_v13, %v61_v11 }
 0x105   :  { %148 = vrsqrt.f32 %v62_v14  ;;  %vm82_vm2 = vcmp.eq.f32.partialorder %v62_v14, inf  ;;  %v85_v32 = vand.u32 2147483648, %v62_v14  ;;  %vm84_vm3 = vcmp.eq.f32.partialorder %v62_v14, 0.0 }
 0x106   :  { %v65_v16 = vmul.f32 %v147_v13, %v64_v15 }
 0x108   :  { %v66_v17 = vmul.f32 0.5, %v65_v16 }
 0x10a   :  { %v67_v18 = vsub.f32 1.5, %v66_v17 }
 0x10b   :  { %v149_v19 = vpop.eup %148 }
 0x10c   :  { %v68_v20 = vmul.f32 %v147_v13, %v67_v18  ;;  %v76_v21 = vmul.f32 %v149_v19, %v62_v14 }
 0x10e   :  { %v69_v22 = vmul.f32 %v68_v20, %v61_v11  ;;  %v77_v23 = vmul.f32 %v149_v19, %v76_v21 }
 0x110   :  { %v78_v25 = vmul.f32 0.5, %v77_v23  ;;  %v71_v26 = vsel %vm70_vm0, %v61_v11, %v69_v22 }
 0x111   :  { %v74_v27 = vsel %vm72_vm1, %v73_v24, %v71_v26 }
 0x112   :  { %v79_v28 = vsub.f32 1.5, %v78_v25  ;;  %v87_v29 = vadd.f32 1e-05, %v74_v27 }
 0x114   :  { %v80_v30 = vmul.f32 %v149_v19, %v79_v28  ;;  %150 = vrcp.f32 %v87_v29 }
 0x116   :  { %v81_v31 = vmul.f32 %v80_v30, %v62_v14 }
 0x118   :  { %v83_v33 = vsel %vm82_vm2, %v62_v14, %v81_v31 }
 0x119   :  { %v86_v34 = vsel %vm84_vm3, %v85_v32, %v83_v33 }
 0x11a   :  { %v151_v35 = vpop.eup %150  ;;  %v88_v36 = vadd.f32 1e-05, %v86_v34 }
 0x11b   :  { %v91_v37 = vmul.f32 %v151_v35, %v87_v29 }
 0x11c   :  { %152 = vrcp.f32 %v88_v36 }
 0x11d   :  { %v93_v38 = vsub.f32 2.0, %v91_v37 }
 0x11f   :  { %v95_v39 = vmul.f32 %v151_v35, %v93_v38 }
 0x121   :  { %v97_v40 = vmul.f32 %v95_v39, %v87_v29 }
 0x122   :  { %v153_v41 = vpop.eup %152 }
 0x123   :  { %v92_v42 = vmul.f32 %v153_v41, %v88_v36  ;;  %v99_v43 = vsub.f32 2.0, %v97_v40 }
 0x125   :  { %v94_v44 = vsub.f32 2.0, %v92_v42  ;;  %v101_v45 = vmul.f32 %v99_v43, %v95_v39 }
 0x127   :  { %v96_v47 = vmul.f32 %v153_v41, %v94_v44  ;;  %v103_v48 = vmul.f32 %v101_v45, %v53_v4 }
 0x129   :  { %v98_v50 = vmul.f32 %v96_v47, %v88_v36  ;;  %v109_v51 = vmul.f32 %v144_v46, %v103_v48 }
 0x12b   :  { %v100_v52 = vsub.f32 2.0, %v98_v50  ;;  %v115_v53 = vadd.f32 %v145_v49, %v109_v51 }
 0x12d   :  { %v102_v54 = vmul.f32 %v100_v52, %v96_v47  ;;  %117 = vst [vmem:[#allocation7] sm:$0xff] %v115_v53 }
 0x12f   :  { %v104_v55 = vmul.f32 %v102_v54, %v54_v8 }
 0x131   :  { %v110_v56 = vmul.f32 %v144_v46, %v104_v55 }
 0x133   :  { %v116_v57 = vadd.f32 %v145_v49, %v110_v56 }
 0x135   :  { %118 = vst [vmem:[#allocation7 + $0x8] sm:$0xff] %v116_v57 }
 0x136   :  { %131 = dma.vmem_to_hbm [thread:$0]  %s124_s25, 256, %s126_s28, [#allocation4], %s233_s20, %s233_s20, %s234_s21  }
 0x137   :  { %230 = dma.done.wait [#allocation4], 256  }
 0x138   :  { %231 = vsyncadd [#allocation4], 4294967040 }
 0x139   :  { %136 = vsyncpa [#allocation3], 1 }
 0x13a   :  { %137 = vsyncpa [#allocation6], 1 }
 0x13b   :  { %138 = vsyncpa [#allocation4], 1 }

</bundles_post_ra>
